<compile_context>
chip_gen: v6e
topology: v6e:2x2x1
jax: 0.10.0
libtpu: 0.0.40
codegen_flags: <defaults>
</compile_context>

<pallas_src>
import jax
import jax.numpy as jnp
from jax import lax
from jax.experimental import pallas as pl
from jax.experimental.pallas import tpu as pltpu


def _discriminator_kernel(h_pl_ref, h_mi_ref, v_ref, b_ref, out_ref):
    """One row tile of the discriminator.

    h_pl_ref, h_mi_ref : (TM, n_h) VMEM tiles of positive / corrupted embeddings
    v_ref              : (8, n_h)  VMEM, v = W @ c replicated over 8 sublanes (resident)
    b_ref              : (1,)      SMEM scalar bias
    out_ref            : (2, TM)   lane-dense logits tile (row 0 = sc_1, row 1 = sc_2)
    """
    v = v_ref[...]                       # (8, n_h), all rows identical
    bias = b_ref[0]                      # scalar from SMEM

    # Contract the feature axis of both operands: (8, n_h) x (TM, n_h)^T -> (8, TM).
    dn = (((1,), (1,)), ((), ()))
    sc1 = lax.dot_general(v, h_pl_ref[...], dn, preferred_element_type=jnp.float32)
    sc2 = lax.dot_general(v, h_mi_ref[...], dn, preferred_element_type=jnp.float32)

    # Single full-tile, lane-dense store.
    out_ref[...] = (jnp.concatenate([sc1[0:1, :], sc2[0:1, :]], axis=0)
                    + bias).astype(out_ref.dtype)


def discriminator_forward(c, h_pl, h_mi, w, b, s_bias1=None, s_bias2=None, *, tm=512):
    """Pallas equivalent of Discriminator.forward.

    c     : (n_h,) or (1, n_h) summary vector (what c.expand_as(h_pl) broadcasts)
    h_pl  : (N, n_h) positive embeddings
    h_mi  : (N, n_h) corrupted embeddings
    w     : (n_h, n_h) bilinear weight (PyTorch weight[0])
    b     : scalar bias
    returns logits: (N, 2)
    """
    N, n_h = h_pl.shape
    c2 = jnp.reshape(c, (-1, n_h))
    if c2.shape[0] != 1:
        # TODO(synk): general per-row c bilinear path not implemented; stHGC always
        # passes a single summary vector (AvgReadout), which c.expand_as broadcasts.
        raise ValueError("c must be a single summary vector of shape (n_h,) or (1, n_h)")
    c_vec = c2[0].astype(jnp.float32)

    # Algebraic hoist (valid because c is broadcast over rows):
    #   f_k(h, c) = h @ W @ c + b = h @ v + b,  v = W @ c.
    v = jnp.dot(w.astype(jnp.float32), c_vec)                          # (n_h,)
    v_rep = jnp.broadcast_to(v.reshape(1, n_h), (8, n_h)).astype(h_pl.dtype)
    b_arr = jnp.reshape(jnp.asarray(b, dtype=jnp.float32), (1,))

    # Row tile: as large as useful, multiple of 128 so the (2, tm) output block is
    # lane-dense (unmasked stores) and the h tiles are MXU/DMA friendly.
    tm = int(min(tm, pl.cdiv(N, 128) * 128))
    tm = max(tm, 128)
    n_pad = int(pl.cdiv(N, tm)) * tm
    if n_pad != N:
        pad = ((0, n_pad - N), (0, 0))
        h_pl_p = jnp.pad(h_pl, pad)
        h_mi_p = jnp.pad(h_mi, pad)
    else:
        h_pl_p, h_mi_p = h_pl, h_mi

    grid = (n_pad // tm,)

    scores = pl.pallas_call(
        _discriminator_kernel,
        out_shape=jax.ShapeDtypeStruct((2, n_pad), jnp.float32),
        grid_spec=pltpu.PrefetchScalarGridSpec(
            num_scalar_prefetch=0,
            grid=grid,
            in_specs=[
                pl.BlockSpec((tm, n_h), lambda i: (i, 0)),           # h_pl row tile
                pl.BlockSpec((tm, n_h), lambda i: (i, 0)),           # h_mi row tile
                pl.BlockSpec((8, n_h), lambda i: (0, 0)),            # v = W@c, resident
                pl.BlockSpec(memory_space=pltpu.MemorySpace.SMEM),   # scalar bias
            ],
            out_specs=pl.BlockSpec((2, tm), lambda i: (0, i)),
        ),
        compiler_params=pltpu.CompilerParams(
            dimension_semantics=("parallel",),
        ),
    )(h_pl_p, h_mi_p, v_rep, b_arr)

    logits = scores[:, :N].T                                          # (N, 2)

    # Optional additive score biases (matches `sc_1 += s_bias1`, `sc_2 += s_bias2`).
    if s_bias1 is not None:
        logits = logits.at[:, 0:1].add(jnp.reshape(s_bias1, (N, 1)))
    if s_bias2 is not None:
        logits = logits.at[:, 1:2].add(jnp.reshape(s_bias2, (N, 1)))
    return logits


def _reference(c, h_pl, h_mi, w, b):
    N, n_h = h_pl.shape
    c_x = jnp.broadcast_to(jnp.reshape(c, (-1, n_h)), (N, n_h))
    sc1 = jnp.sum((h_pl @ w) * c_x, axis=-1, keepdims=True) + b
    sc2 = jnp.sum((h_mi @ w) * c_x, axis=-1, keepdims=True) + b
    return jnp.concatenate([sc1, sc2], axis=1)


if __name__ == "__main__":
    N = 1000    # number of nodes / spots (exercises padding + a 2-step grid)
    n_h = 128   # hidden dim

    key = jax.random.PRNGKey(0)
    k_c, k_pl, k_mi, k_w = jax.random.split(key, 4)

    # Deterministic inputs
    c = jax.random.normal(k_c, (1, n_h), dtype=jnp.float32)      # graph summary vector
    h_pl = jax.random.normal(k_pl, (N, n_h), dtype=jnp.float32)  # positive embeddings
    h_mi = jax.random.normal(k_mi, (N, n_h), dtype=jnp.float32)  # corrupted embeddings

    # Bilinear params: xavier_uniform weight (1, n_h, n_h) -> squeeze to (n_h, n_h); bias = 0
    limit = (6.0 / (n_h + n_h)) ** 0.5
    w = jax.random.uniform(k_w, (n_h, n_h), minval=-limit, maxval=limit, dtype=jnp.float32)
    b = jnp.float32(0.0)

    logits = discriminator_forward(c, h_pl, h_mi, w, b)
    logits = jax.block_until_ready(logits)

    ref = _reference(c, h_pl, h_mi, w, b)
    assert logits.shape == (N, 2)
    assert jnp.allclose(logits, ref, atol=1e-3, rtol=1e-3), (logits, ref)

    print("KERNEL_OK")
</pallas_src>

<mosaic_0001>
module attributes {stable_mosaic.version = 11 : i64} {
  func.func @_discriminator_kernel(%arg0: i32, %arg1: memref<512x128xf32, #tpu.memory_space<vmem>>, %arg2: memref<512x128xf32, #tpu.memory_space<vmem>>, %arg3: memref<8x128xf32, #tpu.memory_space<vmem>>, %arg4: memref<1xf32, #tpu.memory_space<smem>>, %arg5: memref<2x512xf32, #tpu.memory_space<vmem>>) attributes {dimension_semantics = [#tpu.dimension_semantics<parallel>], iteration_bounds = array<i64: 2>, scalar_prefetch = 0 : i64, scratch_operands = 0 : i64, tpu.core_type = #tpu.core_type<tc>, window_params = [{transform_indices = @transform_0, window_bounds = array<i64: 512, 128>}, {transform_indices = @transform_1, window_bounds = array<i64: 512, 128>}, {pipeline_mode = #tpu.pipeline_mode<synchronous>, transform_indices = @transform_2, window_bounds = array<i64: 8, 128>}, {transform_indices = @transform_3, window_bounds = array<i64: 1>}, {transform_indices = @transform_4, window_bounds = array<i64: 2, 512>}]} {
    %c0 = arith.constant 0 : index
    %c0_0 = arith.constant 0 : index
    %0 = vector.load %arg3[%c0, %c0_0] : memref<8x128xf32, #tpu.memory_space<vmem>>, vector<8x128xf32>
    %c0_1 = arith.constant 0 : index
    %1 = memref.load %arg4[%c0_1] : memref<1xf32, #tpu.memory_space<smem>>
    %c0_2 = arith.constant 0 : index
    %c0_3 = arith.constant 0 : index
    %2 = vector.load %arg1[%c0_2, %c0_3] : memref<512x128xf32, #tpu.memory_space<vmem>>, vector<512x128xf32>
    %cst = arith.constant dense<0.000000e+00> : vector<8x512xf32>
    %3 = tpu.matmul %0, %2, %cst {dimension_numbers = #tpu.dot_dimension_numbers<[1], [1], [0], [0], [0, 0, 1, 0], [], []>} : vector<8x128xf32>, vector<512x128xf32>, vector<8x512xf32> -> vector<8x512xf32>
    %c0_4 = arith.constant 0 : index
    %c0_5 = arith.constant 0 : index
    %4 = vector.load %arg2[%c0_4, %c0_5] : memref<512x128xf32, #tpu.memory_space<vmem>>, vector<512x128xf32>
    %cst_6 = arith.constant dense<0.000000e+00> : vector<8x512xf32>
    %5 = tpu.matmul %0, %4, %cst_6 {dimension_numbers = #tpu.dot_dimension_numbers<[1], [1], [0], [0], [0, 0, 1, 0], [], []>} : vector<8x128xf32>, vector<512x128xf32>, vector<8x512xf32> -> vector<8x512xf32>
    %6 = vector.extract_strided_slice %3 {offsets = [0, 0], sizes = [1, 512], strides = [1, 1]} : vector<8x512xf32> to vector<1x512xf32>
    %7 = vector.extract_strided_slice %5 {offsets = [0, 0], sizes = [1, 512], strides = [1, 1]} : vector<8x512xf32> to vector<1x512xf32>
    %8 = tpu.concatenate %6, %7 in 0 : vector<1x512xf32>, vector<1x512xf32> -> vector<2x512xf32>
    %9 = vector.broadcast %1 : f32 to vector<2x512xf32>
    %10 = arith.addf %8, %9 : vector<2x512xf32>
    %c0_7 = arith.constant 0 : index
    %c0_8 = arith.constant 0 : index
    %11 = vector.load %arg5[%c0_7, %c0_8] : memref<2x512xf32, #tpu.memory_space<vmem>>, vector<2x512xf32>
    tpu.vector_store %arg5[%c0_7, %c0_8], %10 {strides = array<i32>} : memref<2x512xf32, #tpu.memory_space<vmem>>, vector<2x512xf32>,
    return
  }
  func.func @transform_0(%arg0: i32) -> (i32, i32) {
    %c0_i32 = arith.constant 0 : i32
    %c0_i32_0 = arith.constant 0 : i32
    return %arg0, %c0_i32 : i32, i32
  }
  func.func @transform_1(%arg0: i32) -> (i32, i32) {
    %c0_i32 = arith.constant 0 : i32
    %c0_i32_0 = arith.constant 0 : i32
    return %arg0, %c0_i32 : i32, i32
  }
  func.func @transform_2(%arg0: i32) -> (i32, i32) {
    %c0_i32 = arith.constant 0 : i32
    %c0_i32_0 = arith.constant 0 : i32
    %c0_i32_1 = arith.constant 0 : i32
    return %c0_i32, %c0_i32_0 : i32, i32
  }
  func.func @transform_3(%arg0: i32) -> i32 {
    %c0_i32 = arith.constant 0 : i32
    %c0_i32_0 = arith.constant 0 : i32
    return %c0_i32 : i32
  }
  func.func @transform_4(%arg0: i32) -> (i32, i32) {
    %c0_i32 = arith.constant 0 : i32
    %c0_i32_0 = arith.constant 0 : i32
    return %c0_i32, %arg0 : i32, i32
  }
}

</mosaic_0001>

<bundles_post_ra>
// kernel: tpu_custom_call.1
= control target key start
LH: loop header
LB: loop body
LE: loop exit
PB: predicated region body
PF: predicated region fallthrough
CT: control target
= control target key end

     0   :  { %s1632_s0 = inlined_call_operand.hbm [shape: f32[1024,128], index: 0, kind: input, shape index: {}]   ;;  %s1633_s1 = inlined_call_operand.hbm [shape: f32[1024,128], index: 1, kind: input, shape index: {}]   ;;  %s1634_s2 = inlined_call_operand.hbm [shape: f32[8,128], index: 2, kind: input, shape index: {}]   ;;  %s1635_s3 = inlined_call_operand.<no memory space> [shape: f32[1], index: 3, kind: input, shape index: {}]   ;;  %s1636_s4 = inlined_call_operand.hbm [shape: f32[2,1024], index: 4, kind: output, shape index: {}]  }
   0x1   :  { %9 = sst [smem:[#allocation2]] %s1635_s3 }
   0x2   :  { %10 = vsyncpa [#allocation4], 0 }
   0x3   :  { %12 = vsyncpa [#allocation4 + $0x1], 0 }
   0x4   :  { %13 = vsyncpa [#allocation7], 0 }
   0x5   :  { %15 = vsyncpa [#allocation7 + $0x1], 0 }
   0x6   :  { %16 = vsyncpa [#allocation5], 0 }
   0x7   :  { %18 = vsyncpa [#allocation5 + $0x1], 0  ;;  %s1263_s17 = smov 0   ;;  %s1265_s18 = smov 0  }
   0x8   :  { %s1267_s19 = smov 0   ;;  %s1269_s20 = smov 0  }
   0x9 LB: > { %s1284_s3 = sadd.s32 4294967295, %s1226_s20   ;;  %s848_s21 = sadd.s32 4294967294, %s1226_s20   ;;  %s1226_s20 = sphi %s1269_s20, %s1657_s20   ;;  %s1222_s19 = sphi %s1267_s19, %s1656_s19   ;;  %s1218_s18 = sphi %s1265_s18, %s1655_s18   ;;  %s1214_s17 = sphi %s1263_s17, %s1654_s17  }
   0xa   : > { %s1288_s22 = sadd.s32 1, %s1226_s20   ;;  %s31_s23 = sadd.s32 1, %s1222_s19 }
   0xb   : > { %s28_s24 = ssub.s32 %s1226_s20, %s1288_s22  ;;  %p38_p0 = scmp.ne.s32.totalorder %s1222_s19, %s1218_s18 }
   0xc   : > { %p29_p1 = scmp.eq.s32.totalorder %s28_s24, 0  ;;  %p39_p2 = scmp.eq.s32.totalorder %s1226_s20, 0 }
   0xd   : > { %p44_p3 = scmp.ne.s32.totalorder %s1218_s18, %s1214_s17  ;;  %p1637_p4 = scmp.eq.s32.totalorder %s1284_s3, 0 }
   0xe   : > { %s1300_s25 = scalar_select %p29_p1, %s1222_s19, %s31_s23  }
   0xf   : > { %p1302_p5 = por %p39_p2, %p38_p0  ;;  %p1308_p6 = por %p1637_p4, %p44_p3 }
  0x10   : > { %p136_p7 = scmp.eq.s32.totalorder %s1284_s3, 1  ;;  %p142_p8 = scmp.eq.s32.totalorder %s848_s21, 1 }
  0x11   : > { %s1641_s27 = scalar_select %p1308_p6, 1, 0 }
  0x12   : > { %p849_p9 = scmp.ge.s32.totalorder %s1226_s20, 1  ;;  %p149_p10 = scmp.lt.s32.totalorder %s1226_s20, 3 }
  0x13   : > { %p1315_p11 = por %p136_p7, %p38_p0  ;;  %p1319_p12 = por %p142_p8, %p44_p3 }
  0x14   : > { %p1323_p13 = pnand %p849_p9, %p149_p10  ;;  %s1228_s5 = smov [#allocation8]  }
  0x15   : > { %s1642_s28 = scalar_select %p1315_p11, 1, 0 }
  0x16   : > { %s1643_s29 = scalar_select %p1319_p12, 1, 0 }
  0x17   : > { %p1017_p2 = pneg %p1323_p13  ;;  %s162_s6 = sshll.u32 %s1228_s5, 4  ;;  %s163_s6 = int_to_ptr.vmem [resolvable:$true] %s162_s6 }
  0x18   : > { %p1033_p4 = scmp.lt.s32.totalorder %s1226_s20, 2  ;;  %p1645_p0 = scmp.eq.s32.totalorder %s1284_s3, 0 }
  0x19   : > { %s176_s8 = sand.u32 1, %s1222_s19   ;;  %s1083_s11 = scalar_lea.vmem %s163_s6, 128 }
  0x1a   : > { %p1333_p7 = pnand %p1017_p2, %p1645_p0  ;;  %p1340_p3 = pnand %p1033_p4, %p1302_p5 }
  0x1b   : > { %s1344_s10 = sshll.u32 %s176_s8, 9  ;;  %p1084_p9 = scmp.ne.s32.totalorder %s163_s6, %s1083_s11 }
  0x1c   : > { %p1074_p8 = pneg %p1333_p7  ;;  %p1091_p12 = scmp.lt.s32.totalorder %s163_s6, %s163_s6 }
  0x1d   : > { %p1092_p2 = scmp.lt.s32.totalorder %s1083_s11, %s1083_s11 }
  0x1e   : > { %p1086_p10 = pnand %p1084_p9, %p1074_p8 }
  0x1f   : > { %p1093_p0 = por %p1092_p2, %p1091_p12 }
  0x20   : > { %p1087_p1 = pneg %p1086_p10 }
  0x22   : > { %p1094_p11 = pnand %p1093_p0, %p1087_p1 }
  0x24   : > { %1097 = shalt.err (!%p1094_p11)
}
  0x25   : > { %1020 = dma.hbm_to_vmem [thread:$0]  (!%p1333_p7), %s1634_s2, 128, %s163_s6, [#allocation7]  }
  0x26   : > { %s868_s14 = sshll.u32 %s1226_s20, 13  ;;  %s180_s15 = scalar_lea.vmem [#allocation3], %s1344_s10 }
  0x27   : > { %s187_s16 = sshll.u32 %s180_s15, 4  ;;  %s1360_s24 = scalar_lea.hbm %s1632_s0, %s868_s14  ;;  %s1362_s16 = int_to_ptr.vmem [resolvable:$true] %s187_s16 }
  0x28   : > { %s1364_s26 = scalar_lea.sflag [#allocation4], %s176_s8  ;;  %s1098_s5 = scalar_lea.hbm %s1360_s24, 8192 }
  0x29   : > { %p1099_p4 = scmp.ne.s32.totalorder %s1360_s24, %s1098_s5  ;;  %p1100_p5 = pneg %p1340_p3 }
  0x2a   : > { %s1103_s11 = scalar_lea.hbm %s1632_s0, 16384  ;;  %p1104_p1 = scmp.lt.s32.totalorder %s1360_s24, %s1632_s0 }
  0x2b   : > { %p1101_p11 = pnand %p1100_p5, %p1099_p4  ;;  %p1105_p7 = scmp.lt.s32.totalorder %s1103_s11, %s1098_s5 }
  0x2d   : > { %p1102_p12 = pneg %p1101_p11  ;;  %p1106_p8 = por %p1105_p7, %p1104_p1 }
  0x2f   : > { %p1107_p9 = pnand %p1106_p8, %p1102_p12 }
  0x31   : > { %1110 = shalt.err (!%p1107_p9)
}
  0x32   : > { %s1111_s8 = scalar_lea.vmem %s1362_s16, 8192  ;;  %s1229_s15 = smov [#allocation3]  }
  0x33   : > { %p1112_p10 = scmp.ne.s32.totalorder %s1362_s16, %s1111_s8  ;;  %s1116_s21 = sshll.u32 %s1229_s15, 4  ;;  %s1117_s21 = int_to_ptr.vmem [resolvable:$false] %s1116_s21 }
  0x34   : > { %s1118_s23 = scalar_lea.vmem %s1117_s21, 16384  ;;  %p1119_p4 = scmp.lt.s32.totalorder %s1362_s16, %s1117_s21 }
  0x35   : > { %p1114_p2 = pnand %p1112_p10, %p1100_p5  ;;  %p1120_p11 = scmp.lt.s32.totalorder %s1118_s23, %s1111_s8 }
  0x37   : > { %p1115_p0 = pneg %p1114_p2  ;;  %p1121_p6 = por %p1120_p11, %p1119_p4 }
  0x39   : > { %p1122_p1 = pnand %p1121_p6, %p1115_p0 }
  0x3b   : > { %1125 = shalt.err (!%p1122_p1)
}
  0x3c   : > { %s1230_s5 = smov 128   ;;  %s1231_s6 = smov 8  }
  0x3d   : > { %1024 = dma.hbm_to_vmem [thread:$0]  (!%p1340_p3), %s1360_s24, 8192, %s1362_s16, %s1364_s26, %s1230_s5, %s1230_s5, %s1231_s6  }
  0x3e   : > { %s1399_s12 = scalar_lea.hbm %s1633_s1, %s868_s14  ;;  %s201_s13 = scalar_lea.vmem [#allocation6], %s1344_s10 }
  0x3f   : > { %s208_s8 = sshll.u32 %s201_s13, 4  ;;  %s197_s15 = sand.u32 1, %s1226_s20   ;;  %s1403_s8 = int_to_ptr.vmem [resolvable:$true] %s208_s8 }
  0x40   : > { %s198_s21 = scalar_lea.sflag [#allocation7], %s197_s15  ;;  %s1126_s23 = scalar_lea.hbm %s1399_s12, 8192 }
  0x41   : > { %p1127_p6 = scmp.ne.s32.totalorder %s1399_s12, %s1126_s23  ;;  %s1131_s14 = scalar_lea.hbm %s1633_s1, 16384 }
  0x42   : > { %p1132_p8 = scmp.lt.s32.totalorder %s1399_s12, %s1633_s1  ;;  %p1133_p9 = scmp.lt.s32.totalorder %s1131_s14, %s1126_s23 }
  0x43   : > { %p1129_p12 = pnand %p1127_p6, %p1100_p5 }
  0x44   : > { %p1134_p10 = por %p1133_p9, %p1132_p8 }
  0x45   : > { %p1130_p7 = pneg %p1129_p12 }
  0x47   : > { %p1135_p2 = pnand %p1134_p10, %p1130_p7 }
  0x49   : > { %1138 = shalt.err (!%p1135_p2)
}
  0x4a   : > { %s1139_s10 = scalar_lea.vmem %s1403_s8, 8192  ;;  %s1232_s11 = smov [#allocation6]  }
  0x4b   : > { %p1140_p0 = scmp.ne.s32.totalorder %s1403_s8, %s1139_s10  ;;  %s1144_s13 = sshll.u32 %s1232_s11, 4  ;;  %s1145_s13 = int_to_ptr.vmem [resolvable:$false] %s1144_s13 }
  0x4c   : > { %s1146_s15 = scalar_lea.vmem %s1145_s13, 16384  ;;  %p1147_p1 = scmp.lt.s32.totalorder %s1403_s8, %s1145_s13 }
  0x4d   : > { %p1142_p4 = pnand %p1140_p0, %p1100_p5  ;;  %p1148_p6 = scmp.lt.s32.totalorder %s1146_s15, %s1139_s10 }
  0x4f   : > { %p1143_p11 = pneg %p1142_p4  ;;  %p1149_p12 = por %p1148_p6, %p1147_p1 }
  0x51   : > { %p1150_p8 = pnand %p1149_p12, %p1143_p11 }
  0x53   : > { %1153 = shalt.err (!%p1150_p8)
}
  0x54   : > { %1027 = dma.hbm_to_vmem [thread:$0]  (!%p1340_p3), %s1399_s12, 8192, %s1403_s8, %s198_s21, %s1230_s5, %s1230_s5, %s1231_s6  }
  0x55   : > { %220 = sbr.rel (%p1323_p13) target bundleno = 447 (0x1bf), region = 36  ;;  %s1433_s23 = sand.u32 (!%p1323_p13), 1, %s1218_s18  }
  0x56   : > { %s859_s16 = sshll.u32 (!%p1323_p13), %s1433_s23, 9  ;;  %s223_s24 = scalar_lea.sflag (!%p1323_p13), [#allocation4], %s1433_s23 }
  0x57   : > { %s1437_s14 = scalar_lea.vmem (!%p1323_p13), [#allocation3], %s859_s16  ;;  %p1648_p5 = scmp.ne.s32.totalorder (!%p1323_p13), %s1641_s27, 0 }
  0x5a   : > { %1197 = dma.done.wait (%p1648_p5), %s223_s24, 8192  }
  0x5b   : > { %1199 = vsyncadd (%p1648_p5), %s223_s24, 4294959104  ;;  %s231_s9 = sand.u32 1, %s1284_s3   ;;  %s1444_s5 = scalar_lea.vmem [#allocation6], %s859_s16 }
  0x5c   : > { %s232_s30 = scalar_lea.sflag [#allocation7], %s231_s9 }
  0x5d   : > { %1201 = dma.done.wait (%p1648_p5), %s232_s30, 8192  }
  0x5e   : > { %1203 = vsyncadd (%p1648_p5), %s232_s30, 4294959104  ;;  %p1649_p13 = scmp.eq.s32.totalorder %s1284_s3, 0 }
  0x60   : > { %1205 = dma.done.wait (%p1649_p13), [#allocation7], 128   ;;  %p1650_p3 = pmov %p1649_p13 }
  0x61   : > { %v305_v0 = vld [vmem:[%s1437_s14 + $0xf8] sm:$0xff]  ;;  %v304_v4 = vld [vmem:[%s1437_s14 + $0xf0] sm:$0xff]  ;;  %v303_v8 = vld [vmem:[%s1437_s14 + $0xe8] sm:$0xff]  ;;  %s273_s27 = sld [smem:[#allocation2]]  ;;  %vm698_vm0 = vcmask 1040384   ;;  %s862_s6 = sshll.u32 %s1433_s23, 3 }
  0x62   : > { %1207 = vsyncadd (%p1650_p3), [#allocation7], 4294967168  ;;  %v337_v1 = vld [vmem:[%s1437_s14 + $0x1f8] sm:$0xff]  ;;  %871 = vmatprep.subr.mxu0 %v305_v0  ;;  %v336_v5 = vld [vmem:[%s1437_s14 + $0x1f0] sm:$0xff]  ;;  %s870_s12 = sshll.u32 %s1284_s3, 7  ;;  %s268_s8 = scalar_lea.vmem [#allocation9], %s862_s6 }
  0x63   : > { %v289_v2 = vld [vmem:[%s1437_s14 + $0x78] sm:$0xff]  ;;  %905 = vmatprep.subr.mxu1 %v337_v1  ;;  %v288_v6 = vld [vmem:[%s1437_s14 + $0x70] sm:$0xff]  ;;  %v335_v9 = vld [vmem:[%s1437_s14 + $0x1e8] sm:$0xff]  ;;  %s746_s21 = sshll.u32 %s268_s8, 4  ;;  %s744_s10 = scalar_lea.hbm %s1636_s4, %s870_s12  ;;  %s747_s21 = int_to_ptr.vmem [resolvable:$true] %s746_s21 }
  0x64   : > { %v321_v3 = vld [vmem:[%s1437_s14 + $0x178] sm:$0xff]  ;;  %872 = vmatpush3.xpose.msra.mxu0 %v289_v2  ;;  %v320_v7 = vld [vmem:[%s1437_s14 + $0x170] sm:$0xff]  ;;  %v287_v10 = vld [vmem:[%s1437_s14 + $0x68] sm:$0xff]  ;;  %s732_s11 = scalar_lea.sflag [#allocation5], %s1433_s23  ;;  %s1154_s13 = scalar_lea.vmem %s747_s21, 128 }
  0x65   : > { %906 = vmatpush3.xpose.msra.mxu1 %v321_v3  ;;  %873 = vmatprep.subr.mxu0 %v304_v4  ;;  %v319_v11 = vld [vmem:[%s1437_s14 + $0x168] sm:$0xff]  ;;  %v302_v12 = vld [vmem:[%s1437_s14 + $0xe0] sm:$0xff]  ;;  %v301_v16 = vld [vmem:[%s1437_s14 + $0xd8] sm:$0xff]  ;;  %p1155_p7 = scmp.ne.s32.totalorder %s747_s21, %s1154_s13  ;;  %p1651_p9 = scmp.ne.s32.totalorder %s1642_s28, 0 }
  0x66   : > { %907 = vmatprep.subr.mxu1 %v336_v5  ;;  %v334_v13 = vld [vmem:[%s1437_s14 + $0x1e0] sm:$0xff]  ;;  %v333_v17 = vld [vmem:[%s1437_s14 + $0x1d8] sm:$0xff]  ;;  %v300_v20 = vld [vmem:[%s1437_s14 + $0xd0] sm:$0xff]  ;;  %s1234_s15 = smov [#allocation9]  }
  0x67   : > { %v286_v14 = vld [vmem:[%s1437_s14 + $0x60] sm:$0xff]  ;;  %v285_v18 = vld [vmem:[%s1437_s14 + $0x58] sm:$0xff]  ;;  %v332_v21 = vld [vmem:[%s1437_s14 + $0x1d0] sm:$0xff]  ;;  %p1156_p10 = pnand %p1155_p7, %p1651_p9  ;;  %s1158_s16 = sshll.u32 %s1234_s15, 4  ;;  %s1159_s16 = int_to_ptr.vmem [resolvable:$false] %s1158_s16 }
  0x68   : > { %874 = vmatpush3.xpose.msra.mxu0 %v288_v6  ;;  %v318_v15 = vld [vmem:[%s1437_s14 + $0x160] sm:$0xff]  ;;  %v317_v19 = vld [vmem:[%s1437_s14 + $0x158] sm:$0xff]  ;;  %v284_v22 = vld [vmem:[%s1437_s14 + $0x50] sm:$0xff]  ;;  %s1160_s3 = scalar_lea.vmem %s1159_s16, 256  ;;  %p1161_p0 = scmp.lt.s32.totalorder %s747_s21, %s1159_s16 }
  0x69   : > { %908 = vmatpush3.xpose.msra.mxu1 %v320_v7  ;;  %875 = vmatprep.subr.mxu0 %v303_v8  ;;  %v316_v23 = vld [vmem:[%s1437_s14 + $0x150] sm:$0xff]  ;;  %v299_v24 = vld [vmem:[%s1437_s14 + $0xc8] sm:$0xff]  ;;  %v1480_v26 = vld [vmem:[#allocation8] sm:$0xff]  ;;  %p1157_p2 = pneg %p1156_p10  ;;  %p1162_p4 = scmp.lt.s32.totalorder %s1160_s3, %s1154_s13 }
  0x6a   : > { %909 = vmatprep.subr.mxu1 %v335_v9  ;;  %v331_v25 = vld [vmem:[%s1437_s14 + $0x1c8] sm:$0xff]  ;;  %v298_v29 = vld [vmem:[%s1437_s14 + $0xc0] sm:$0xff]  ;;  %903 = vmatprep.mubr.f32.mxu0 %v1480_v26  ;;  %v297_v33 = vld [vmem:[%s1437_s14 + $0xb8] sm:$0xff] }
  0x6b   : > { %v283_v27 = vld [vmem:[%s1437_s14 + $0x48] sm:$0xff]  ;;  %v330_v30 = vld [vmem:[%s1437_s14 + $0x1c0] sm:$0xff]  ;;  %937 = vmatprep.mubr.f32.mxu1 %v1480_v26  ;;  %v329_v34 = vld [vmem:[%s1437_s14 + $0x1b8] sm:$0xff]  ;;  %p1163_p11 = por %p1162_p4, %p1161_p0 }
  0x6c   : > { %876 = vmatpush3.xpose.msra.mxu0 %v287_v10  ;;  %v315_v28 = vld [vmem:[%s1437_s14 + $0x148] sm:$0xff]  ;;  %v282_v31 = vld [vmem:[%s1437_s14 + $0x40] sm:$0xff]  ;;  %v281_v35 = vld [vmem:[%s1437_s14 + $0x38] sm:$0xff] }
  0x6d   : > { %910 = vmatpush3.xpose.msra.mxu1 %v319_v11  ;;  %877 = vmatprep.subr.mxu0 %v302_v12  ;;  %v314_v32 = vld [vmem:[%s1437_s14 + $0x140] sm:$0xff]  ;;  %v313_v36 = vld [vmem:[%s1437_s14 + $0x138] sm:$0xff]  ;;  %v296_v37 = vld [vmem:[%s1437_s14 + $0xb0] sm:$0xff]  ;;  %p1164_p1 = pnand %p1163_p11, %p1157_p2 }
  0x6e   : > { %911 = vmatprep.subr.mxu1 %v334_v13  ;;  %v328_v38 = vld [vmem:[%s1437_s14 + $0x1b0] sm:$0xff]  ;;  %v295_v41 = vld [vmem:[%s1437_s14 + $0xa8] sm:$0xff]  ;;  %v294_v45 = vld [vmem:[%s1437_s14 + $0xa0] sm:$0xff] }
  0x6f   : > { %v280_v39 = vld [vmem:[%s1437_s14 + $0x30] sm:$0xff]  ;;  %v327_v42 = vld [vmem:[%s1437_s14 + $0x1a8] sm:$0xff]  ;;  %v326_v46 = vld [vmem:[%s1437_s14 + $0x1a0] sm:$0xff] }
  0x70   : > { %878 = vmatpush3.xpose.msra.mxu0 %v286_v14  ;;  %v312_v40 = vld [vmem:[%s1437_s14 + $0x130] sm:$0xff]  ;;  %v279_v43 = vld [vmem:[%s1437_s14 + $0x28] sm:$0xff]  ;;  %v278_v47 = vld [vmem:[%s1437_s14 + $0x20] sm:$0xff] }
  0x71   : > { %912 = vmatpush3.xpose.msra.mxu1 %v318_v15  ;;  %879 = vmatprep.subr.mxu0 %v301_v16  ;;  %v311_v44 = vld [vmem:[%s1437_s14 + $0x128] sm:$0xff]  ;;  %v310_v48 = vld [vmem:[%s1437_s14 + $0x120] sm:$0xff]  ;;  %v293_v49 = vld [vmem:[%s1437_s14 + $0x98] sm:$0xff] }
  0x72   : > { %913 = vmatprep.subr.mxu1 %v333_v17  ;;  %v325_v50 = vld [vmem:[%s1437_s14 + $0x198] sm:$0xff]  ;;  %v292_v53 = vld [vmem:[%s1437_s14 + $0x90] sm:$0xff]  ;;  %v291_v57 = vld [vmem:[%s1437_s14 + $0x88] sm:$0xff] }
  0x73   : > { %v277_v51 = vld [vmem:[%s1437_s14 + $0x18] sm:$0xff]  ;;  %v324_v54 = vld [vmem:[%s1437_s14 + $0x190] sm:$0xff]  ;;  %v323_v58 = vld [vmem:[%s1437_s14 + $0x188] sm:$0xff] }
  0x74   : > { %880 = vmatpush3.xpose.msra.mxu0 %v285_v18  ;;  %v309_v52 = vld [vmem:[%s1437_s14 + $0x118] sm:$0xff]  ;;  %v276_v55 = vld [vmem:[%s1437_s14 + $0x10] sm:$0xff]  ;;  %v275_v59 = vld [vmem:[%s1437_s14 + $0x8] sm:$0xff] }
  0x75   : > { %914 = vmatpush3.xpose.msra.mxu1 %v317_v19  ;;  %881 = vmatprep.subr.mxu0 %v300_v20  ;;  %v308_v56 = vld [vmem:[%s1437_s14 + $0x110] sm:$0xff]  ;;  %v307_v60 = vld [vmem:[%s1437_s14 + $0x108] sm:$0xff]  ;;  %v290_v61 = vld [vmem:[%s1437_s14 + $0x80] sm:$0xff] }
  0x76   : > { %915 = vmatprep.subr.mxu1 %v332_v21  ;;  %v322_v62 = vld [vmem:[%s1437_s14 + $0x180] sm:$0xff]  ;;  %v511_v1 = vld [vmem:[%s1444_s5 + $0xf8] sm:$0xff]  ;;  %v510_v5 = vld [vmem:[%s1444_s5 + $0xf0] sm:$0xff] }
  0x77   : > { %v274_v63 = vld [vmem:[%s1437_s14] sm:$0xff]  ;;  %v543_v2 = vld [vmem:[%s1444_s5 + $0x1f8] sm:$0xff]  ;;  %v542_v6 = vld [vmem:[%s1444_s5 + $0x1f0] sm:$0xff] }
  0x78   : > { %882 = vmatpush3.xpose.msra.mxu0 %v284_v22  ;;  %v306_v0 = vld [vmem:[%s1437_s14 + $0x100] sm:$0xff]  ;;  %v495_v3 = vld [vmem:[%s1444_s5 + $0x78] sm:$0xff]  ;;  %v494_v7 = vld [vmem:[%s1444_s5 + $0x70] sm:$0xff] }
  0x79   : > { %916 = vmatpush3.xpose.msra.mxu1 %v316_v23  ;;  %883 = vmatprep.subr.mxu0 %v299_v24  ;;  %v527_v4 = vld [vmem:[%s1444_s5 + $0x178] sm:$0xff]  ;;  %v526_v8 = vld [vmem:[%s1444_s5 + $0x170] sm:$0xff]  ;;  %v509_v9 = vld [vmem:[%s1444_s5 + $0xe8] sm:$0xff] }
  0x7a   : > { %917 = vmatprep.subr.mxu1 %v331_v25  ;;  %v541_v10 = vld [vmem:[%s1444_s5 + $0x1e8] sm:$0xff]  ;;  %v508_v13 = vld [vmem:[%s1444_s5 + $0xe0] sm:$0xff]  ;;  %v507_v17 = vld [vmem:[%s1444_s5 + $0xd8] sm:$0xff] }
  0x7b   : > { %v493_v11 = vld [vmem:[%s1444_s5 + $0x68] sm:$0xff]  ;;  %v540_v14 = vld [vmem:[%s1444_s5 + $0x1e0] sm:$0xff]  ;;  %v539_v18 = vld [vmem:[%s1444_s5 + $0x1d8] sm:$0xff] }
  0x7c   : > { %884 = vmatpush3.xpose.msra.mxu0 %v283_v27  ;;  %v525_v12 = vld [vmem:[%s1444_s5 + $0x168] sm:$0xff]  ;;  %v492_v15 = vld [vmem:[%s1444_s5 + $0x60] sm:$0xff]  ;;  %v491_v19 = vld [vmem:[%s1444_s5 + $0x58] sm:$0xff] }
  0x7d   : > { %918 = vmatpush3.xpose.msra.mxu1 %v315_v28  ;;  %885 = vmatprep.subr.mxu0 %v298_v29  ;;  %v524_v16 = vld [vmem:[%s1444_s5 + $0x160] sm:$0xff]  ;;  %v523_v20 = vld [vmem:[%s1444_s5 + $0x158] sm:$0xff]  ;;  %v506_v21 = vld [vmem:[%s1444_s5 + $0xd0] sm:$0xff] }
  0x7e   : > { %919 = vmatprep.subr.mxu1 %v330_v30  ;;  %v538_v22 = vld [vmem:[%s1444_s5 + $0x1d0] sm:$0xff]  ;;  %v505_v25 = vld [vmem:[%s1444_s5 + $0xc8] sm:$0xff]  ;;  %v504_v30 = vld [vmem:[%s1444_s5 + $0xc0] sm:$0xff] }
  0x7f   : > { %v490_v23 = vld [vmem:[%s1444_s5 + $0x50] sm:$0xff]  ;;  %v537_v27 = vld [vmem:[%s1444_s5 + $0x1c8] sm:$0xff] }
  0x80   : > { %886 = vmatpush3.xpose.msra.mxu0 %v282_v31  ;;  %v522_v24 = vld [vmem:[%s1444_s5 + $0x150] sm:$0xff]  ;;  %v489_v28 = vld [vmem:[%s1444_s5 + $0x48] sm:$0xff]  ;;  %v536_v31 = vld [vmem:[%s1444_s5 + $0x1c0] sm:$0xff] }
  0x81   : > { %920 = vmatpush3.xpose.msra.mxu1 %v314_v32  ;;  %887 = vmatprep.subr.mxu0 %v297_v33  ;;  %v521_v29 = vld [vmem:[%s1444_s5 + $0x148] sm:$0xff]  ;;  %v488_v32 = vld [vmem:[%s1444_s5 + $0x40] sm:$0xff] }
  0x82   : > { %921 = vmatprep.subr.mxu1 %v329_v34  ;;  %v520_v33 = vld [vmem:[%s1444_s5 + $0x140] sm:$0xff]  ;;  %v503_v34 = vld [vmem:[%s1444_s5 + $0xb8] sm:$0xff] }
  0x84   : > { %888 = vmatpush3.xpose.msra.mxu0 %v281_v35  ;;  %v535_v35 = vld [vmem:[%s1444_s5 + $0x1b8] sm:$0xff] }
  0x85   : > { %922 = vmatpush3.xpose.msra.mxu1 %v313_v36  ;;  %889 = vmatprep.subr.mxu0 %v296_v37  ;;  %v487_v36 = vld [vmem:[%s1444_s5 + $0x38] sm:$0xff] }
  0x86   : > { %923 = vmatprep.subr.mxu1 %v328_v38  ;;  %v519_v37 = vld [vmem:[%s1444_s5 + $0x138] sm:$0xff]  ;;  %v502_v38 = vld [vmem:[%s1444_s5 + $0xb0] sm:$0xff] }
  0x88   : > { %890 = vmatpush3.xpose.msra.mxu0 %v280_v39  ;;  %v534_v39 = vld [vmem:[%s1444_s5 + $0x1b0] sm:$0xff] }
  0x89   : > { %924 = vmatpush3.xpose.msra.mxu1 %v312_v40  ;;  %891 = vmatprep.subr.mxu0 %v295_v41  ;;  %v486_v40 = vld [vmem:[%s1444_s5 + $0x30] sm:$0xff] }
  0x8a   : > { %925 = vmatprep.subr.mxu1 %v327_v42  ;;  %v518_v41 = vld [vmem:[%s1444_s5 + $0x130] sm:$0xff]  ;;  %v501_v42 = vld [vmem:[%s1444_s5 + $0xa8] sm:$0xff] }
  0x8c   : > { %892 = vmatpush3.xpose.msra.mxu0 %v279_v43  ;;  %v533_v43 = vld [vmem:[%s1444_s5 + $0x1a8] sm:$0xff] }
  0x8d   : > { %926 = vmatpush3.xpose.msra.mxu1 %v311_v44  ;;  %893 = vmatprep.subr.mxu0 %v294_v45  ;;  %v485_v44 = vld [vmem:[%s1444_s5 + $0x28] sm:$0xff] }
  0x8e   : > { %927 = vmatprep.subr.mxu1 %v326_v46  ;;  %v517_v45 = vld [vmem:[%s1444_s5 + $0x128] sm:$0xff]  ;;  %v500_v46 = vld [vmem:[%s1444_s5 + $0xa0] sm:$0xff] }
  0x90   : > { %894 = vmatpush3.xpose.msra.mxu0 %v278_v47  ;;  %v532_v47 = vld [vmem:[%s1444_s5 + $0x1a0] sm:$0xff] }
  0x91   : > { %928 = vmatpush3.xpose.msra.mxu1 %v310_v48  ;;  %895 = vmatprep.subr.mxu0 %v293_v49  ;;  %v484_v48 = vld [vmem:[%s1444_s5 + $0x20] sm:$0xff] }
  0x92   : > { %929 = vmatprep.subr.mxu1 %v325_v50  ;;  %v516_v49 = vld [vmem:[%s1444_s5 + $0x120] sm:$0xff]  ;;  %v499_v50 = vld [vmem:[%s1444_s5 + $0x98] sm:$0xff] }
  0x94   : > { %896 = vmatpush3.xpose.msra.mxu0 %v277_v51  ;;  %v531_v51 = vld [vmem:[%s1444_s5 + $0x198] sm:$0xff] }
  0x95   : > { %930 = vmatpush3.xpose.msra.mxu1 %v309_v52  ;;  %897 = vmatprep.subr.mxu0 %v292_v53  ;;  %v483_v52 = vld [vmem:[%s1444_s5 + $0x18] sm:$0xff] }
  0x96   : > { %931 = vmatprep.subr.mxu1 %v324_v54  ;;  %v515_v53 = vld [vmem:[%s1444_s5 + $0x118] sm:$0xff]  ;;  %v498_v54 = vld [vmem:[%s1444_s5 + $0x90] sm:$0xff] }
  0x98   : > { %898 = vmatpush3.xpose.msra.mxu0 %v276_v55  ;;  %v530_v55 = vld [vmem:[%s1444_s5 + $0x190] sm:$0xff] }
  0x99   : > { %932 = vmatpush3.xpose.msra.mxu1 %v308_v56  ;;  %899 = vmatprep.subr.mxu0 %v291_v57  ;;  %v482_v56 = vld [vmem:[%s1444_s5 + $0x10] sm:$0xff] }
  0x9a   : > { %933 = vmatprep.subr.mxu1 %v323_v58  ;;  %v514_v57 = vld [vmem:[%s1444_s5 + $0x110] sm:$0xff]  ;;  %v497_v58 = vld [vmem:[%s1444_s5 + $0x88] sm:$0xff] }
  0x9c   : > { %900 = vmatpush3.xpose.msra.mxu0 %v275_v59  ;;  %v529_v59 = vld [vmem:[%s1444_s5 + $0x188] sm:$0xff] }
  0x9d   : > { %934 = vmatpush3.xpose.msra.mxu1 %v307_v60  ;;  %901 = vmatprep.subr.mxu0 %v290_v61  ;;  %v481_v60 = vld [vmem:[%s1444_s5 + $0x8] sm:$0xff] }
  0x9e   : > { %935 = vmatprep.subr.mxu1 %v322_v62  ;;  %v513_v61 = vld [vmem:[%s1444_s5 + $0x108] sm:$0xff]  ;;  %v496_v62 = vld [vmem:[%s1444_s5 + $0x80] sm:$0xff] }
  0xa0   : > { %902 = vmatpush3.xpose.msra.mxu0 %v274_v63  ;;  %v528_v63 = vld [vmem:[%s1444_s5 + $0x180] sm:$0xff] }
  0xa1   : > { %936 = vmatpush3.xpose.msra.mxu1 %v306_v0  ;;  %939 = vmatprep.subr.mxu0 %v511_v1  ;;  %v480_v0 = vld [vmem:[%s1444_s5] sm:$0xff] }
  0xa2   : > { %973 = vmatprep.subr.mxu1 %v543_v2  ;;  %v512_v1 = vld [vmem:[%s1444_s5 + $0x100] sm:$0xff] }
  0xa3   : > { %904 = vmatmul.mubr.f32.vlgmr.msra.gmra.mxu0 %v1480_v26 }
  0xa4   : > { %938 = vmatmul.mubr.f32.vlgmr.msra.gmra.mxu1 %v1480_v26  ;;  %940 = vmatpush3.xpose.msra.mxu0 %v495_v3 }
  0xa5   : > { %974 = vmatpush3.xpose.msra.mxu1 %v527_v4  ;;  %941 = vmatprep.subr.mxu0 %v510_v5  ;;  %v1233_v4 = vmov 1983009808  }
  0xa6   : > { %975 = vmatprep.subr.mxu1 %v542_v6  ;;  %971 = vmatprep.mubr.f32.mxu0 %v1480_v26  ;;  %v715_v5 = vunpack.c.l.s4 %v1233_v4  ;;  %v717_v6 = vlaneseq }
  0xa7   : > { %1005 = vmatprep.mubr.f32.mxu1 %v1480_v26 }
  0xa8   : > { %942 = vmatpush3.xpose.msra.mxu0 %v494_v7 }
  0xa9   : > { %976 = vmatpush3.xpose.msra.mxu1 %v526_v8  ;;  %943 = vmatprep.subr.mxu0 %v509_v9 }
  0xaa   : > { %977 = vmatprep.subr.mxu1 %v541_v10 }
  0xac   : > { %944 = vmatpush3.xpose.msra.mxu0 %v493_v11 }
  0xad   : > { %978 = vmatpush3.xpose.msra.mxu1 %v525_v12  ;;  %945 = vmatprep.subr.mxu0 %v508_v13  ;;  %v716_v13 = vunpack.c.0.s8 %v715_v5 }
  0xae   : > { %979 = vmatprep.subr.mxu1 %v540_v14  ;;  %v718_v14 = vshrl.u32 %v717_v6, 7 }
  0xb0   : > { %946 = vmatpush3.xpose.msra.mxu0 %v492_v15  ;;  %v703_v15 = vstv %s273_s27 }
  0xb1   : > { %980 = vmatpush3.xpose.msra.mxu1 %v524_v16  ;;  %947 = vmatprep.subr.mxu0 %v507_v17 }
  0xb2   : > { %981 = vmatprep.subr.mxu1 %v539_v18 }
  0xb4   : > { %948 = vmatpush3.xpose.msra.mxu0 %v491_v19 }
  0xb5   : > { %982 = vmatpush3.xpose.msra.mxu1 %v523_v20  ;;  %949 = vmatprep.subr.mxu0 %v506_v21 }
  0xb6   : > { %983 = vmatprep.subr.mxu1 %v538_v22  ;;  %v719_v22 = vsub.s32 %v716_v13, %v718_v14 }
  0xb8   : > { %950 = vmatpush3.xpose.msra.mxu0 %v490_v23 }
  0xb9   : > { %984 = vmatpush3.xpose.msra.mxu1 %v522_v24  ;;  %951 = vmatprep.subr.mxu0 %v505_v25 }
  0xba   : > { %985 = vmatprep.subr.mxu1 %v537_v27 }
  0xbc   : > { %952 = vmatpush3.xpose.msra.mxu0 %v489_v28 }
  0xbd   : > { %986 = vmatpush3.xpose.msra.mxu1 %v521_v29  ;;  %953 = vmatprep.subr.mxu0 %v504_v30 }
  0xbe   : > { %987 = vmatprep.subr.mxu1 %v536_v31 }
  0xc0   : > { %954 = vmatpush3.xpose.msra.mxu0 %v488_v32 }
  0xc1   : > { %988 = vmatpush3.xpose.msra.mxu1 %v520_v33  ;;  %955 = vmatprep.subr.mxu0 %v503_v34 }
  0xc2   : > { %989 = vmatprep.subr.mxu1 %v535_v35 }
  0xc4   : > { %956 = vmatpush3.xpose.msra.mxu0 %v487_v36 }
  0xc5   : > { %990 = vmatpush3.xpose.msra.mxu1 %v519_v37  ;;  %957 = vmatprep.subr.mxu0 %v502_v38 }
  0xc6   : > { %991 = vmatprep.subr.mxu1 %v534_v39 }
  0xc8   : > { %958 = vmatpush3.xpose.msra.mxu0 %v486_v40 }
  0xc9   : > { %992 = vmatpush3.xpose.msra.mxu1 %v518_v41  ;;  %959 = vmatprep.subr.mxu0 %v501_v42 }
  0xca   : > { %993 = vmatprep.subr.mxu1 %v533_v43 }
  0xcc   : > { %960 = vmatpush3.xpose.msra.mxu0 %v485_v44 }
  0xcd   : > { %994 = vmatpush3.xpose.msra.mxu1 %v517_v45  ;;  %961 = vmatprep.subr.mxu0 %v500_v46 }
  0xce   : > { %995 = vmatprep.subr.mxu1 %v532_v47 }
  0xd0   : > { %962 = vmatpush3.xpose.msra.mxu0 %v484_v48 }
  0xd1   : > { %996 = vmatpush3.xpose.msra.mxu1 %v516_v49  ;;  %963 = vmatprep.subr.mxu0 %v499_v50 }
  0xd2   : > { %997 = vmatprep.subr.mxu1 %v531_v51 }
  0xd4   : > { %964 = vmatpush3.xpose.msra.mxu0 %v483_v52 }
  0xd5   : > { %998 = vmatpush3.xpose.msra.mxu1 %v515_v53  ;;  %965 = vmatprep.subr.mxu0 %v498_v54 }
  0xd6   : > { %999 = vmatprep.subr.mxu1 %v530_v55 }
  0xd8   : > { %966 = vmatpush3.xpose.msra.mxu0 %v482_v56 }
  0xd9   : > { %1000 = vmatpush3.xpose.msra.mxu1 %v514_v57  ;;  %967 = vmatprep.subr.mxu0 %v497_v58 }
  0xda   : > { %1001 = vmatprep.subr.mxu1 %v529_v59 }
  0xdc   : > { %968 = vmatpush3.xpose.msra.mxu0 %v481_v60 }
  0xdd   : > { %1002 = vmatpush3.xpose.msra.mxu1 %v513_v61  ;;  %969 = vmatprep.subr.mxu0 %v496_v62 }
  0xde   : > { %1003 = vmatprep.subr.mxu1 %v528_v63 }
  0xe0   : > { %970 = vmatpush3.xpose.msra.mxu0 %v480_v0 }
  0xe1   : > { %1004 = vmatpush3.xpose.msra.mxu1 %v512_v1 }
  0xe3   : > { %972 = vmatmul.mubr.f32.vlgmr.msra.gmra.mxu0 %v1480_v26 }
  0xe4   : > { %1006 = vmatmul.mubr.f32.vlgmr.msra.gmra.mxu1 %v1480_v26 }
 0x163   : > { %v404_v2 = vpop.f32.mrf.mxu0 }
 0x164   : > { %v475_v3 = vpop.f32.mrf.mxu1 }
 0x165   : > { %v406_v7 = vpop.f32.mrf.mxu0 }
 0x166   : > { %v477_v8 = vpop.f32.mrf.mxu1 }
 0x1a3   : > { %v610_v9 = vpop.f32.mrf.mxu0 }
 0x1a4   : > { %v681_v10 = vpop.f32.mrf.mxu1  ;;  %v690_v11 = vrot.slane %v610_v9, 7 }
 0x1a5   : > { %v692_v12 = vrot.slane %v681_v10, 7  ;;  %v612_v16 = vpop.f32.mrf.mxu0 }
 0x1a6   : > { %v683_v26 = vpop.f32.mrf.mxu1  ;;  %v699_v17 = vsel %vm698_vm0, %v404_v2, %v690_v11  ;;  %v691_v19 = vrot.slane %v612_v16, 7 }
 0x1a7   : > { %v701_v18 = vsel %vm698_vm0, %v475_v3, %v692_v12  ;;  %v693_v20 = vrot.slane %v683_v26, 7  ;;  %v704_v24 = vadd.f32 %v703_v15, %v699_v17 }
 0x1a8   : > { %v700_v21 = vsel %vm698_vm0, %v406_v7, %v691_v19  ;;  %v706_v25 = vadd.f32 %v703_v15, %v701_v18 }
 0x1a9   : > { %v702_v23 = vsel %vm698_vm0, %v477_v8, %v693_v20  ;;  %v705_v27 = vadd.f32 %v703_v15, %v700_v21 }
 0x1aa   : > { %v707_v28 = vadd.f32 %v703_v15, %v702_v23 }
 0x1ab   : > { %v712_v29 = vcombine.low %v704_v24, %v705_v27 }
 0x1ac   : > { %v713_v30 = vcombine.low %v706_v25, %v707_v28 }
 0x1ad   : > { %v720_v31 = vrot.slane %v712_v29, %v719_v22 }
 0x1ae   : > { %v727_v32 = vrot.slane %v713_v30, %v719_v22 }
 0x1b0   : > { %v728_v33 = vcombine.low %v720_v31, %v727_v32 }
 0x1b2   : > { %730 = vst [vmem:[%s268_s8] sm:$0xff] %v728_v33 }
 0x1b3   : > { %1167 = shalt.err (!%p1164_p1)
}
 0x1b4   : > { %s1168_s24 = scalar_lea.hbm %s744_s10, 128  ;;  %s1172_s9 = scalar_lea.hbm %s1636_s4, 256 }
 0x1b5   : > { %p1169_p6 = scmp.ne.s32.totalorder %s744_s10, %s1168_s24  ;;  %p1173_p5 = scmp.lt.s32.totalorder %s744_s10, %s1636_s4 }
 0x1b6   : > { %p1174_p13 = scmp.lt.s32.totalorder %s1172_s9, %s1168_s24 }
 0x1b7   : > { %p1170_p12 = pnand %p1169_p6, %p1651_p9 }
 0x1b8   : > { %p1175_p3 = por %p1174_p13, %p1173_p5 }
 0x1b9   : > { %p1171_p8 = pneg %p1170_p12 }
 0x1bb   : > { %p1176_p7 = pnand %p1175_p3, %p1171_p8 }
 0x1bd   : > { %1179 = shalt.err (!%p1176_p7)
}
 0x1be   : > { %1015 = dma.vmem_to_hbm [thread:$0]  (%p1651_p9), %s747_s21, 128, %s744_s10, %s732_s11  }
 0x1bf PF: > { %s758_s27 = sand.u32 1, %s1214_s17   ;;  %p1652_p10 = scmp.ne.s32.totalorder %s1643_s29, 0 }
 0x1c0   : > { %p1653_p2 = scmp.ge.s32.totalorder %s1226_s20, 2  ;;  %s759_s6 = scalar_lea.sflag [#allocation5], %s758_s27 }
 0x1c2   : > { %p1029_p0 = pnand %p1653_p2, %p1652_p10 }
 0x1c4   : > { %p1030_p4 = pneg %p1029_p0 }
 0x1c6   : > { %1209 = dma.done.wait (%p1030_p4), %s759_s6, 128  }
 0x1c7   : > { %1211 = vsyncadd (%p1030_p4), %s759_s6, 4294967168  ;;  %p21_p11 = scmp.ge.s32.totalorder %s1288_s22, 4   ;;  %s1654_s17 = smov %s1218_s18 }
 0x1c8   : > { %s1655_s18 = smov %s1222_s19  ;;  %s1656_s19 = smov %s1300_s25 }
 0x1c9   : > { %s1657_s20 = smov %s1288_s22  ;;  %23 = sbr.rel (!%p21_p11) target bundleno = 9 (0x9), region = 98 }
 0x1ce   :  { %764 = vsyncpa [#allocation4], 1 }
 0x1cf   :  { %766 = vsyncpa [#allocation4 + $0x1], 1 }
 0x1d0   :  { %767 = vsyncpa [#allocation7], 1 }
 0x1d1   :  { %769 = vsyncpa [#allocation7 + $0x1], 1 }
 0x1d2   :  { %770 = vsyncpa [#allocation5], 1 }
 0x1d3   :  { %772 = vsyncpa [#allocation5 + $0x1], 1 }

</bundles_post_ra>
